<compile_context>
chip_gen: v7x
topology: tpu7x:2x2x1
jax: 0.10.0
libtpu: 0.0.40
codegen_flags: <defaults>
</compile_context>

<pallas_src>
import jax
import jax.numpy as jnp
from jax import lax
from jax.experimental import pallas as pl
from jax.experimental.pallas import tpu as pltpu


_NEG_BIG = -1e30   # plain Python float (finite stand-in for -inf; avoids NaNs)


def _logsigmoid(x):
    # log(sigmoid(x)) = min(x, 0) - log1p(exp(-|x|))   (numerically stable)
    return jnp.minimum(x, 0.0) - jnp.log1p(jnp.exp(-jnp.abs(x)))


def _logaddexp(a, b):
    m = jnp.maximum(a, b)
    return m + jnp.log1p(jnp.exp(-jnp.abs(a - b)))


def _shift_down(x, s, fill):
    # y[t] = x[t - s] for t >= s, `fill` for t < s.  `s` is a static Python int.
    # Static sublane slice + concat; a pltpu.roll + iota-mask is an equivalent
    # XLU-side alternative.
    n = x.shape[0]
    pad = jnp.full((s,) + x.shape[1:], fill, dtype=x.dtype)
    if s >= n:
        return pad[:n]
    return jnp.concatenate([pad, x[: n - s]], axis=0)


def embed_position_kernel(x_ref, wc_ref, wl_ref, bc_ref, bl_ref, o_ref):
    # x_ref: [1, N, D]  wc/wl_ref: [D, D] bf16  bc/bl_ref: [1, D] f32  o_ref: [1, N, D]
    x = x_ref[0]                                    # [N, D]
    x_f32 = x.astype(jnp.float32)
    x_mxu = x.astype(jnp.bfloat16)

    # Two lane-aligned MXU matmuls (bf16 inputs, f32 accumulation).
    a = _logsigmoid(
        jnp.dot(x_mxu, wc_ref[...], preferred_element_type=jnp.float32)
        + bc_ref[...])                              # log_coeffs  [N, D]
    b = (jnp.dot(x_mxu, wl_ref[...], preferred_element_type=jnp.float32)
         + bl_ref[...])                             # logits      [N, D]

    # Log-depth (Hillis-Steele) inclusive associative scan along the token axis.
    n = a.shape[0]
    s = 1
    while s < n:                                    # log2(N) full-vreg steps
        a_prev = _shift_down(a, s, 0.0)             # identity: a = 0
        b_prev = _shift_down(b, s, _NEG_BIG)        # identity: b = "-inf"
        b = _logaddexp(b_prev + a, b)               # uses OLD a (right operand)
        a = a_prev + a
        s *= 2

    # h_{-1} = 0  =>  h_t = logaddexp(A_t, B_t)
    pos_embs = _logaddexp(a, b)
    o_ref[0] = (x_f32 + pos_embs).astype(o_ref.dtype)


def embed_position(tokens, w, b):
    """tokens: [B, N, D]; w: [D, 2D] (= torch weight.T); b: [2D] -> [B, N, D]."""
    B, N, D = tokens.shape
    # Split the dense weight into lane-aligned halves; pre-cast to bf16 once.
    w_coeff = w[:, :D].astype(jnp.bfloat16)
    w_logit = w[:, D:].astype(jnp.bfloat16)
    b_coeff = b[:D].reshape(1, D).astype(jnp.float32)
    b_logit = b[D:].reshape(1, D).astype(jnp.float32)

    return pl.pallas_call(
        embed_position_kernel,
        out_shape=jax.ShapeDtypeStruct((B, N, D), tokens.dtype),
        grid_spec=pltpu.PrefetchScalarGridSpec(
            num_scalar_prefetch=0,
            grid=(B,),
            in_specs=[
                pl.BlockSpec((1, N, D), lambda i: (i, 0, 0)),   # tokens, per batch
                pl.BlockSpec((D, D), lambda i: (0, 0)),         # W_coeff (resident)
                pl.BlockSpec((D, D), lambda i: (0, 0)),         # W_logit (resident)
                pl.BlockSpec((1, D), lambda i: (0, 0)),         # b_coeff
                pl.BlockSpec((1, D), lambda i: (0, 0)),         # b_logit
            ],
            out_specs=pl.BlockSpec((1, N, D), lambda i: (i, 0, 0)),
        ),
        compiler_params=pltpu.CompilerParams(
            dimension_semantics=("parallel",),      # batches are independent
        ),
    )(tokens, w_coeff, w_logit, b_coeff, b_logit)


def embed_position_reference(tokens, w, b, matmul_dtype=jnp.float32):
    """Pure-JAX mirror of the PyTorch forward (using_prev_context=False)."""
    d = tokens.shape[-1]
    y = jnp.einsum(
        "bnd,de->bne",
        tokens.astype(matmul_dtype), w.astype(matmul_dtype),
        preferred_element_type=jnp.float32,
    ) + b
    log_coeffs = jax.nn.log_sigmoid(y[..., :d])
    logits = y[..., d:]
    prepended = jnp.pad(logits, ((0, 0), (1, 0), (0, 0)))
    a_star = jnp.pad(jnp.cumsum(log_coeffs, axis=1), ((0, 0), (1, 0), (0, 0)))
    b_star = lax.cumlogsumexp(prepended - a_star, axis=1)   # positive axis (XLA req.)
    pos_embs = (a_star + b_star)[:, 1:, :]
    return tokens + pos_embs


if __name__ == "__main__":
    B, N, D = 2, 8, 32  # batch, n_tok, d_emb

    key = jax.random.PRNGKey(0)
    k_tok, k_w, k_b = jax.random.split(key, 3)

    tokens = jax.random.normal(k_tok, (B, N, D), dtype=jnp.float32)
    # nn.Linear(d_emb, 2*d_emb): torch weight [2D, D], bias [2D]; keep W transposed.
    w = jax.random.normal(k_w, (D, 2 * D), dtype=jnp.float32) * (1.0 / jnp.sqrt(D))
    b = jax.random.normal(k_b, (2 * D,), dtype=jnp.float32) * 0.02

    out = jax.block_until_ready(embed_position(tokens, w, b))
    assert out.shape == (B, N, D) and out.dtype == tokens.dtype

    # Check vs. the same math with identical bf16-matmul quantization.
    ref_bf16 = embed_position_reference(tokens, w, b, matmul_dtype=jnp.bfloat16)
    err_bf16 = float(jnp.max(jnp.abs(out - ref_bf16)))
    assert jnp.allclose(out, ref_bf16, atol=1e-2, rtol=1e-2), err_bf16

    # Sanity check vs. exact f32 math of the PyTorch module (bf16 matmul noise only).
    ref_f32 = embed_position_reference(tokens, w, b, matmul_dtype=jnp.float32)
    err_f32 = float(jnp.max(jnp.abs(out - ref_f32)))
    assert jnp.allclose(out, ref_f32, atol=1e-1, rtol=1e-1), err_f32

    print("KERNEL_OK")
</pallas_src>

<mosaic_0001>
module attributes {stable_mosaic.version = 11 : i64} {
  func.func @embed_position_kernel(%arg0: i32, %arg1: memref<1x8x32xf32, #tpu.memory_space<vmem>>, %arg2: memref<32x32xbf16, #tpu.memory_space<vmem>>, %arg3: memref<32x32xbf16, #tpu.memory_space<vmem>>, %arg4: memref<1x32xf32, #tpu.memory_space<vmem>>, %arg5: memref<1x32xf32, #tpu.memory_space<vmem>>, %arg6: memref<1x8x32xf32, #tpu.memory_space<vmem>>) attributes {dimension_semantics = [#tpu.dimension_semantics<parallel>], iteration_bounds = array<i64: 2>, scalar_prefetch = 0 : i64, scratch_operands = 0 : i64, tpu.core_type = #tpu.core_type<tc>, window_params = [{transform_indices = @transform_0, window_bounds = array<i64: 1, 8, 32>}, {pipeline_mode = #tpu.pipeline_mode<synchronous>, transform_indices = @transform_1, window_bounds = array<i64: 32, 32>}, {pipeline_mode = #tpu.pipeline_mode<synchronous>, transform_indices = @transform_2, window_bounds = array<i64: 32, 32>}, {pipeline_mode = #tpu.pipeline_mode<synchronous>, transform_indices = @transform_3, window_bounds = array<i64: 1, 32>}, {pipeline_mode = #tpu.pipeline_mode<synchronous>, transform_indices = @transform_4, window_bounds = array<i64: 1, 32>}, {transform_indices = @transform_5, window_bounds = array<i64: 1, 8, 32>}]} {
    %c0 = arith.constant 0 : index
    %c0_0 = arith.constant 0 : index
    %c0_1 = arith.constant 0 : index
    %0 = vector.load %arg1[%c0, %c0_0, %c0_1] : memref<1x8x32xf32, #tpu.memory_space<vmem>>, vector<1x8x32xf32>
    %1 = vector.shape_cast %0 : vector<1x8x32xf32> to vector<8x32xf32>
    %2 = arith.truncf %1 : vector<8x32xf32> to vector<8x32xbf16>
    %c0_2 = arith.constant 0 : index
    %c0_3 = arith.constant 0 : index
    %3 = vector.load %arg2[%c0_2, %c0_3] : memref<32x32xbf16, #tpu.memory_space<vmem>>, vector<32x32xbf16>
    %cst = arith.constant dense<0.000000e+00> : vector<8x32xf32>
    %4 = tpu.matmul %2, %3, %cst {dimension_numbers = #tpu.dot_dimension_numbers<[1], [0], [0], [1], [0, 0, 1, 1], [], []>} : vector<8x32xbf16>, vector<32x32xbf16>, vector<8x32xf32> -> vector<8x32xf32>
    %c0_4 = arith.constant 0 : index
    %c0_5 = arith.constant 0 : index
    %5 = vector.load %arg4[%c0_4, %c0_5] : memref<1x32xf32, #tpu.memory_space<vmem>>, vector<1x32xf32>
    %6 = vector.broadcast %5 : vector<1x32xf32> to vector<8x32xf32>
    %7 = arith.addf %4, %6 : vector<8x32xf32>
    %cst_6 = arith.constant 0.000000e+00 : f32
    %8 = vector.broadcast %cst_6 : f32 to vector<8x32xf32>
    %9 = arith.minimumf %7, %8 : vector<8x32xf32>
    %10 = math.absf %7 : vector<8x32xf32>
    %cst_7 = arith.constant 0.000000e+00 : f32
    %11 = vector.broadcast %cst_7 : f32 to vector<8x32xf32>
    %12 = arith.subf %11, %10 : vector<8x32xf32>
    %13 = math.exp %12 : vector<8x32xf32>
    %14 = math.log1p %13 : vector<8x32xf32>
    %15 = arith.subf %9, %14 : vector<8x32xf32>
    %c0_8 = arith.constant 0 : index
    %c0_9 = arith.constant 0 : index
    %16 = vector.load %arg3[%c0_8, %c0_9] : memref<32x32xbf16, #tpu.memory_space<vmem>>, vector<32x32xbf16>
    %cst_10 = arith.constant dense<0.000000e+00> : vector<8x32xf32>
    %17 = tpu.matmul %2, %16, %cst_10 {dimension_numbers = #tpu.dot_dimension_numbers<[1], [0], [0], [1], [0, 0, 1, 1], [], []>} : vector<8x32xbf16>, vector<32x32xbf16>, vector<8x32xf32> -> vector<8x32xf32>
    %c0_11 = arith.constant 0 : index
    %c0_12 = arith.constant 0 : index
    %18 = vector.load %arg5[%c0_11, %c0_12] : memref<1x32xf32, #tpu.memory_space<vmem>>, vector<1x32xf32>
    %19 = vector.broadcast %18 : vector<1x32xf32> to vector<8x32xf32>
    %20 = arith.addf %17, %19 : vector<8x32xf32>
    %cst_13 = arith.constant 0.000000e+00 : f32
    %21 = vector.broadcast %cst_13 : f32 to vector<1x32xf32>
    %22 = vector.extract_strided_slice %15 {offsets = [0, 0], sizes = [7, 32], strides = [1, 1]} : vector<8x32xf32> to vector<7x32xf32>
    %23 = tpu.concatenate %21, %22 in 0 : vector<1x32xf32>, vector<7x32xf32> -> vector<8x32xf32>
    %cst_14 = arith.constant -1.000000e+30 : f32
    %24 = vector.broadcast %cst_14 : f32 to vector<1x32xf32>
    %25 = vector.extract_strided_slice %20 {offsets = [0, 0], sizes = [7, 32], strides = [1, 1]} : vector<8x32xf32> to vector<7x32xf32>
    %26 = tpu.concatenate %24, %25 in 0 : vector<1x32xf32>, vector<7x32xf32> -> vector<8x32xf32>
    %27 = arith.addf %26, %15 : vector<8x32xf32>
    %28 = arith.maximumf %27, %20 : vector<8x32xf32>
    %29 = arith.subf %27, %20 : vector<8x32xf32>
    %30 = math.absf %29 : vector<8x32xf32>
    %cst_15 = arith.constant 0.000000e+00 : f32
    %31 = vector.broadcast %cst_15 : f32 to vector<8x32xf32>
    %32 = arith.subf %31, %30 : vector<8x32xf32>
    %33 = math.exp %32 : vector<8x32xf32>
    %34 = math.log1p %33 : vector<8x32xf32>
    %35 = arith.addf %28, %34 : vector<8x32xf32>
    %36 = arith.addf %23, %15 : vector<8x32xf32>
    %cst_16 = arith.constant 0.000000e+00 : f32
    %37 = vector.broadcast %cst_16 : f32 to vector<2x32xf32>
    %38 = vector.extract_strided_slice %36 {offsets = [0, 0], sizes = [6, 32], strides = [1, 1]} : vector<8x32xf32> to vector<6x32xf32>
    %39 = tpu.concatenate %37, %38 in 0 : vector<2x32xf32>, vector<6x32xf32> -> vector<8x32xf32>
    %cst_17 = arith.constant -1.000000e+30 : f32
    %40 = vector.broadcast %cst_17 : f32 to vector<2x32xf32>
    %41 = vector.extract_strided_slice %35 {offsets = [0, 0], sizes = [6, 32], strides = [1, 1]} : vector<8x32xf32> to vector<6x32xf32>
    %42 = tpu.concatenate %40, %41 in 0 : vector<2x32xf32>, vector<6x32xf32> -> vector<8x32xf32>
    %43 = arith.addf %42, %36 : vector<8x32xf32>
    %44 = arith.maximumf %43, %35 : vector<8x32xf32>
    %45 = arith.subf %43, %35 : vector<8x32xf32>
    %46 = math.absf %45 : vector<8x32xf32>
    %cst_18 = arith.constant 0.000000e+00 : f32
    %47 = vector.broadcast %cst_18 : f32 to vector<8x32xf32>
    %48 = arith.subf %47, %46 : vector<8x32xf32>
    %49 = math.exp %48 : vector<8x32xf32>
    %50 = math.log1p %49 : vector<8x32xf32>
    %51 = arith.addf %44, %50 : vector<8x32xf32>
    %52 = arith.addf %39, %36 : vector<8x32xf32>
    %cst_19 = arith.constant 0.000000e+00 : f32
    %53 = vector.broadcast %cst_19 : f32 to vector<4x32xf32>
    %54 = vector.extract_strided_slice %52 {offsets = [0, 0], sizes = [4, 32], strides = [1, 1]} : vector<8x32xf32> to vector<4x32xf32>
    %55 = tpu.concatenate %53, %54 in 0 : vector<4x32xf32>, vector<4x32xf32> -> vector<8x32xf32>
    %cst_20 = arith.constant -1.000000e+30 : f32
    %56 = vector.broadcast %cst_20 : f32 to vector<4x32xf32>
    %57 = vector.extract_strided_slice %51 {offsets = [0, 0], sizes = [4, 32], strides = [1, 1]} : vector<8x32xf32> to vector<4x32xf32>
    %58 = tpu.concatenate %56, %57 in 0 : vector<4x32xf32>, vector<4x32xf32> -> vector<8x32xf32>
    %59 = arith.addf %58, %52 : vector<8x32xf32>
    %60 = arith.maximumf %59, %51 : vector<8x32xf32>
    %61 = arith.subf %59, %51 : vector<8x32xf32>
    %62 = math.absf %61 : vector<8x32xf32>
    %cst_21 = arith.constant 0.000000e+00 : f32
    %63 = vector.broadcast %cst_21 : f32 to vector<8x32xf32>
    %64 = arith.subf %63, %62 : vector<8x32xf32>
    %65 = math.exp %64 : vector<8x32xf32>
    %66 = math.log1p %65 : vector<8x32xf32>
    %67 = arith.addf %60, %66 : vector<8x32xf32>
    %68 = arith.addf %55, %52 : vector<8x32xf32>
    %69 = arith.maximumf %68, %67 : vector<8x32xf32>
    %70 = arith.subf %68, %67 : vector<8x32xf32>
    %71 = math.absf %70 : vector<8x32xf32>
    %cst_22 = arith.constant 0.000000e+00 : f32
    %72 = vector.broadcast %cst_22 : f32 to vector<8x32xf32>
    %73 = arith.subf %72, %71 : vector<8x32xf32>
    %74 = math.exp %73 : vector<8x32xf32>
    %75 = math.log1p %74 : vector<8x32xf32>
    %76 = arith.addf %69, %75 : vector<8x32xf32>
    %77 = arith.addf %1, %76 : vector<8x32xf32>
    %c0_23 = arith.constant 0 : index
    %c0_24 = arith.constant 0 : index
    %c0_25 = arith.constant 0 : index
    %78 = vector.load %arg6[%c0_23, %c0_24, %c0_25] : memref<1x8x32xf32, #tpu.memory_space<vmem>>, vector<1x8x32xf32>
    %79 = vector.shape_cast %78 : vector<1x8x32xf32> to vector<8x32xf32>
    %80 = vector.shape_cast %77 : vector<8x32xf32> to vector<1x8x32xf32>
    tpu.vector_store %arg6[%c0_23, %c0_24, %c0_25], %80 {strides = array<i32>} : memref<1x8x32xf32, #tpu.memory_space<vmem>>, vector<1x8x32xf32>,
    return
  }
  func.func @transform_0(%arg0: i32) -> (i32, i32, i32) {
    %c0_i32 = arith.constant 0 : i32
    %c0_i32_0 = arith.constant 0 : i32
    %c0_i32_1 = arith.constant 0 : i32
    return %arg0, %c0_i32, %c0_i32_0 : i32, i32, i32
  }
  func.func @transform_1(%arg0: i32) -> (i32, i32) {
    %c0_i32 = arith.constant 0 : i32
    %c0_i32_0 = arith.constant 0 : i32
    %c0_i32_1 = arith.constant 0 : i32
    return %c0_i32, %c0_i32_0 : i32, i32
  }
  func.func @transform_2(%arg0: i32) -> (i32, i32) {
    %c0_i32 = arith.constant 0 : i32
    %c0_i32_0 = arith.constant 0 : i32
    %c0_i32_1 = arith.constant 0 : i32
    return %c0_i32, %c0_i32_0 : i32, i32
  }
  func.func @transform_3(%arg0: i32) -> (i32, i32) {
    %c0_i32 = arith.constant 0 : i32
    %c0_i32_0 = arith.constant 0 : i32
    %c0_i32_1 = arith.constant 0 : i32
    return %c0_i32, %c0_i32_0 : i32, i32
  }
  func.func @transform_4(%arg0: i32) -> (i32, i32) {
    %c0_i32 = arith.constant 0 : i32
    %c0_i32_0 = arith.constant 0 : i32
    %c0_i32_1 = arith.constant 0 : i32
    return %c0_i32, %c0_i32_0 : i32, i32
  }
  func.func @transform_5(%arg0: i32) -> (i32, i32, i32) {
    %c0_i32 = arith.constant 0 : i32
    %c0_i32_0 = arith.constant 0 : i32
    %c0_i32_1 = arith.constant 0 : i32
    return %arg0, %c0_i32, %c0_i32_0 : i32, i32, i32
  }
}

</mosaic_0001>

<bundles_post_ra>
// kernel: tpu_custom_call.1
= control target key start
LH: loop header
LB: loop body
LE: loop exit
PB: predicated region body
PF: predicated region fallthrough
CT: control target
= control target key end

     0   :  { %10 = vsyncpa [#allocation3], 0  ;;  %s1209_s0 = inlined_call_operand.hbm [shape: f32[2,8,32], index: 0, kind: input, shape index: {}]   ;;  %s1210_s1 = inlined_call_operand.hbm [shape: bf16[32,32], index: 1, kind: input, shape index: {}]   ;;  %s1211_s2 = inlined_call_operand.hbm [shape: bf16[32,32], index: 2, kind: input, shape index: {}]   ;;  %s1212_s3 = inlined_call_operand.vmem [shape: f32[1,32], index: 3, kind: input, shape index: {}]   ;;  %s1213_s4 = inlined_call_operand.vmem [shape: f32[1,32], index: 4, kind: input, shape index: {}]   ;;  %s1214_s5 = inlined_call_operand.hbm [shape: f32[2,8,32], index: 5, kind: output, shape index: {}]  }
   0x1   :  { %12 = vsyncpa [#allocation3 + $0x1], 0 }
   0x2   :  { %13 = vsyncpa [#allocation6], 0 }
   0x3   :  { %14 = vsyncpa [#allocation4], 0 }
   0x4   :  { %16 = vsyncpa [#allocation4 + $0x1], 0  ;;  %s956_s18 = smov 0   ;;  %s958_s19 = smov 0  }
   0x5   :  { %s960_s20 = smov 0   ;;  %s962_s21 = smov 0  }
   0x6 LB: > { %s977_s22 = sadd.s32 4294967295, %s916_s21   ;;  %s619_s23 = sadd.s32 4294967294, %s916_s21   ;;  %s916_s21 = sphi %s962_s21, %s1234_s21   ;;  %s912_s20 = sphi %s960_s20, %s1233_s20   ;;  %s908_s19 = sphi %s958_s19, %s1232_s19   ;;  %s904_s18 = sphi %s956_s18, %s1231_s18  }
   0x7   : > { %p42_p0 = scmp.ne.s32.totalorder %s908_s19, %s904_s18  ;;  %p1215_p1 = scmp.eq.s32.totalorder %s977_s22, 0 }
   0x8   : > { %p156_p3 = scmp.eq.s32.totalorder %s619_s23, 1  ;;  %p620_p5 = scmp.ge.s32.totalorder %s916_s21, 1 }
   0x9   : > { %p986_p4 = por %p1215_p1, %p42_p0  ;;  %p163_p7 = scmp.lt.s32.totalorder %s916_s21, 3 }
   0xa   : > { %p991_p6 = por %p156_p3, %p42_p0  ;;  %s918_s27 = smov [#allocation5]  }
   0xb   : > { %s1218_s24 = scalar_select %p986_p4, 1, 0 }
   0xc   : > { %s1219_s25 = scalar_select %p991_p6, 1, 0 }
   0xd   : > { %p996_p8 = pnand %p620_p5, %p163_p7  ;;  %s175_s28 = sshll.u32 %s918_s27, 4  ;;  %s1000_s28 = int_to_ptr.vmem [resolvable:$true] %s175_s28 }
   0xe   : > { %s919_s30 = smov [#allocation7]   ;;  %s760_s9 = scalar_lea.hbm %s1210_s1, 256 }
   0xf   : > { %p677_p9 = pneg %p996_p8  ;;  %s188_s6 = sshll.u32 %s919_s30, 4  ;;  %s1011_s6 = int_to_ptr.vmem [resolvable:$true] %s188_s6 }
  0x10   : > { %p761_p12 = scmp.ne.s32.totalorder %s1210_s1, %s760_s9  ;;  %p767_p5 = scmp.lt.u32.totalorder %s760_s9, %s1210_s1 }
  0x11   : > { %p1007_p11 = pnand %p677_p9, %p1215_p1 }
  0x13   : > { %p762_p13 = pneg %p1007_p11 }
  0x15   : > { %p763_p0 = pnand %p762_p13, %p761_p12 }
  0x17   : > { %p764_p3 = pneg %p763_p0 }
  0x19   : > { %p769_p7 = pnand %p767_p5, %p764_p3 }
  0x1b   : > { %772 = shalt.err (!%p769_p7)
}
  0x1c   : > { %s773_s14 = scalar_lea.vmem %s1000_s28, 256  ;;  %p781_p2 = scmp.lt.s32.totalorder %s1000_s28, %s1000_s28 }
  0x1d   : > { %p774_p9 = scmp.ne.s32.totalorder %s1000_s28, %s773_s14  ;;  %p782_p12 = scmp.lt.s32.totalorder %s773_s14, %s773_s14 }
  0x1f   : > { %p776_p10 = pnand %p774_p9, %p762_p13  ;;  %p783_p0 = por %p782_p12, %p781_p2 }
  0x21   : > { %p777_p1 = pneg %p776_p10 }
  0x23   : > { %p784_p6 = pnand %p783_p0, %p777_p1 }
  0x25   : > { %787 = shalt.err (!%p784_p6)
}
  0x26   : > { %s920_s15 = smov 64   ;;  %s921_s16 = smov 4  }
  0x27   : > { %680 = dma.hbm_to_vmem [thread:$0]  (!%p1007_p11), %s1210_s1, 256, %s1000_s28, [#allocation6], %s920_s15, %s920_s15, %s921_s16  }
  0x28   : > { %s788_s7 = scalar_lea.hbm %s1211_s2, 256 }
  0x29   : > { %p789_p2 = scmp.ne.s32.totalorder %s1211_s2, %s788_s7  ;;  %p795_p10 = scmp.lt.u32.totalorder %s788_s7, %s1211_s2 }
  0x2b   : > { %p791_p1 = pnand %p789_p2, %p762_p13 }
  0x2d   : > { %p792_p6 = pneg %p791_p1 }
  0x2f   : > { %p797_p3 = pnand %p795_p10, %p792_p6 }
  0x31   : > { %800 = shalt.err (!%p797_p3)
}
  0x32   : > { %s801_s28 = scalar_lea.vmem %s1011_s6, 256  ;;  %p809_p12 = scmp.lt.s32.totalorder %s1011_s6, %s1011_s6 }
  0x33   : > { %p802_p5 = scmp.ne.s32.totalorder %s1011_s6, %s801_s28  ;;  %p810_p0 = scmp.lt.s32.totalorder %s801_s28, %s801_s28 }
  0x35   : > { %p804_p7 = pnand %p802_p5, %p762_p13  ;;  %p811_p2 = por %p810_p0, %p809_p12 }
  0x37   : > { %p805_p9 = pneg %p804_p7 }
  0x39   : > { %p812_p1 = pnand %p811_p2, %p805_p9 }
  0x3b   : > { %815 = shalt.err (!%p812_p1)
}
  0x3c   : > { %683 = dma.hbm_to_vmem [thread:$0]  (!%p1007_p11), %s1211_s2, 256, %s1011_s6, [#allocation6], %s920_s15, %s920_s15, %s921_s16  }
  0x3d   : > { %s1066_s14 = sadd.s32 1, %s916_s21   ;;  %s29_s29 = sadd.s32 1, %s912_s20 }
  0x3e   : > { %s26_s17 = ssub.s32 %s916_s21, %s1066_s14  ;;  %p36_p13 = scmp.ne.s32.totalorder %s912_s20, %s908_s19 }
  0x3f   : > { %p27_p6 = scmp.eq.s32.totalorder %s26_s17, 0  ;;  %p37_p10 = scmp.eq.s32.totalorder %s916_s21, 0 }
  0x40   : > { %p1222_p3 = scmp.eq.s32.totalorder %s977_s22, 1  ;;  %p694_p7 = scmp.lt.s32.totalorder %s916_s21, 2 }
  0x41   : > { %s1082_s27 = scalar_select %p27_p6, %s912_s20, %s29_s29  }
  0x42   : > { %p1076_p5 = por %p1222_p3, %p36_p13  ;;  %p38_p9 = por %p37_p10, %p36_p13 }
  0x43   : > { %s208_s30 = sand.u32 1, %s912_s20   ;;  %s625_s6 = sshll.u32 %s916_s21, 7 }
  0x44   : > { %s1223_s23 = scalar_select %p1076_p5, 1, 0 }
  0x45   : > { %s624_s7 = sshll.u32 %s208_s30, 3  ;;  %s1089_s8 = scalar_lea.hbm %s1209_s0, %s625_s6 }
  0x46   : > { %s212_s9 = scalar_lea.vmem [#allocation2], %s624_s7  ;;  %p1093_p11 = pnand %p694_p7, %p38_p9 }
  0x47   : > { %s219_s10 = sshll.u32 %s212_s9, 4  ;;  %s209_s28 = scalar_lea.sflag [#allocation3], %s208_s30  ;;  %s1091_s10 = int_to_ptr.vmem [resolvable:$true] %s219_s10 }
  0x48   : > { %s816_s12 = scalar_lea.hbm %s1089_s8, 128  ;;  %p818_p0 = pneg %p1093_p11 }
  0x49   : > { %p817_p12 = scmp.ne.s32.totalorder %s1089_s8, %s816_s12  ;;  %s821_s17 = scalar_lea.hbm %s1209_s0, 256 }
  0x4a   : > { %p822_p13 = scmp.lt.u32.totalorder %s1089_s8, %s1209_s0  ;;  %p823_p6 = scmp.lt.u32.totalorder %s821_s17, %s816_s12 }
  0x4b   : > { %p819_p2 = pnand %p818_p0, %p817_p12  ;;  %p825_p3 = scmp.lt.u32.totalorder %s816_s12, %s1089_s8 }
  0x4c   : > { %p824_p10 = por %p823_p6, %p822_p13 }
  0x4d   : > { %p820_p1 = pneg %p819_p2 }
  0x4e   : > { %p826_p7 = por %p825_p3, %p824_p10 }
  0x50   : > { %p827_p9 = pnand %p826_p7, %p820_p1 }
  0x52   : > { %830 = shalt.err (!%p827_p9)
}
  0x53   : > { %s831_s30 = scalar_lea.vmem %s1091_s10, 128  ;;  %s922_s15 = smov [#allocation2]  }
  0x54   : > { %p832_p12 = scmp.ne.s32.totalorder %s1091_s10, %s831_s30  ;;  %s836_s16 = sshll.u32 %s922_s15, 4  ;;  %s837_s16 = int_to_ptr.vmem [resolvable:$false] %s836_s16 }
  0x55   : > { %s838_s9 = scalar_lea.vmem %s837_s16, 256  ;;  %p839_p4 = scmp.lt.s32.totalorder %s1091_s10, %s837_s16 }
  0x56   : > { %p834_p2 = pnand %p832_p12, %p818_p0  ;;  %p840_p13 = scmp.lt.s32.totalorder %s838_s9, %s831_s30 }
  0x58   : > { %p835_p5 = pneg %p834_p2  ;;  %p841_p6 = por %p840_p13, %p839_p4 }
  0x5a   : > { %p842_p10 = pnand %p841_p6, %p835_p5 }
  0x5c   : > { %845 = shalt.err (!%p842_p10)
}
  0x5d   : > { %687 = dma.hbm_to_vmem [thread:$0]  (!%p1093_p11), %s1089_s8, 128, %s1091_s10, %s209_s28  }
  0x5e   : > { %228 = sbr.rel (%p996_p8) target bundleno = 540 (0x21c), region = 40  ;;  %s1125_s12 = sand.u32 (!%p996_p8), 1, %s908_s19  }
  0x5f   : > { %s627_s13 = sshll.u32 (!%p996_p8), %s1125_s12, 3  ;;  %s231_s29 = scalar_lea.sflag (!%p996_p8), [#allocation3], %s1125_s12 }
  0x60   : > { %s234_s17 = scalar_lea.vmem (!%p996_p8), [#allocation2], %s627_s13  ;;  %p1225_p4 = scmp.ne.s32.totalorder (!%p996_p8), %s1218_s24, 0 }
  0x65   : > { %891 = dma.done.wait (%p1225_p4), %s231_s29, 128  }
  0x66   : > { %893 = vsyncadd (%p1225_p4), %s231_s29, 4294967168  ;;  %p1226_p5 = scmp.eq.s32.totalorder %s977_s22, 0 }
  0x68   : > { %895 = dma.done.wait (%p1226_p5), [#allocation6], 512   ;;  %p1227_p8 = pmov %p1226_p5 }
  0x69   : > { %v923_v0 = vmov 0.0   ;;  %vm924_vm0 = vmmov 0   ;;  %v736_v1 = vld [vmem:[#allocation5] sm:$0xff]   ;;  %v737_v2 = vld [vmem:[#allocation5 + $0x8] sm:$0xff]   ;;  %v1139_v3 = vld [vmem:[%s234_s17] sm:$0xff]  ;;  %vm295_vm1 = vcmask 261120  }
  0x6a   : > { %897 = vsyncadd (%p1227_p8), [#allocation6], 4294966784  ;;  %649 = vmatprep.subr.bf16.mxu0 %v923_v0  ;;  %653 = vmatprep.mubr.msk.bf16.mxu0 %vm924_vm0, %v923_v0  ;;  %v738_v4 = vld [vmem:[#allocation7] sm:$0xff]   ;;  %v271_v5 = vpack.c.bf16 %v1139_v3, %v1139_v3  ;;  %v739_v6 = vld [vmem:[#allocation7 + $0x8] sm:$0xff]   ;;  %vm420_vm2 = vcmask 1040384   ;;  %vm447_vm5 = vcmask 1041408  }
  0x6b   : > { %657 = vmatprep.subr.bf16.mxu1 %v923_v0  ;;  %661 = vmatprep.mubr.msk.bf16.mxu1 %vm924_vm0, %v923_v0  ;;  %v631_v7 = vld [vmem:[%s1212_s3] ss:$0 sm:$0xff]  ;;  %vm474_vm7 = vcmask 1043456   ;;  %s640_s11 = sshll.u32 %s977_s22, 7  ;;  %s268_s28 = scalar_lea.vmem [#allocation8], %s627_s13 }
  0x6c   : > { %650 = vmatpush3.bf16.msra.mxu0 %v736_v1  ;;  %658 = vmatpush3.bf16.msra.mxu1 %v738_v4  ;;  %v635_v22 = vld [vmem:[%s1213_s4] ss:$0 sm:$0xff]  ;;  %s530_s7 = sshll.u32 %s268_s28, 4  ;;  %s1164_s15 = scalar_lea.hbm %s1214_s5, %s640_s11  ;;  %s1166_s7 = int_to_ptr.vmem [resolvable:$true] %s530_s7 }
  0x6d   : > { %651 = vmatprep.subr.bf16.mxu0 %v923_v0  ;;  %659 = vmatprep.subr.bf16.mxu1 %v923_v0  ;;  %s517_s16 = scalar_lea.sflag [#allocation4], %s1125_s12  ;;  %s846_s22 = scalar_lea.vmem %s1166_s7, 128 }
  0x6e   : > { %p847_p11 = scmp.ne.s32.totalorder %s1166_s7, %s846_s22  ;;  %p1228_p0 = scmp.ne.s32.totalorder %s1223_s23, 0 }
  0x6f   : > { %s925_s9 = smov [#allocation8]  }
  0x70   : > { %652 = vmatpush3.bf16.msra.mxu0 %v737_v2  ;;  %660 = vmatpush3.bf16.msra.mxu1 %v739_v6  ;;  %p848_p1 = pnand %p847_p11, %p1228_p0  ;;  %s850_s13 = sshll.u32 %s925_s9, 4  ;;  %s851_s13 = int_to_ptr.vmem [resolvable:$false] %s850_s13 }
  0x71   : > { %s852_s29 = scalar_lea.vmem %s851_s13, 256  ;;  %p853_p7 = scmp.lt.s32.totalorder %s1166_s7, %s851_s13 }
  0x72   : > { %p849_p3 = pneg %p848_p1  ;;  %p854_p9 = scmp.lt.s32.totalorder %s852_s29, %s846_s22 }
  0x73   : > { %654 = vmatmul.mubr.msk.bf16.vlgmr.msra.gmra.mrb[0].mxu0 %vm295_vm1, %v271_v5  ;;  %662 = vmatmul.mubr.msk.bf16.vlgmr.msra.gmra.mrb[0].mxu1 %vm295_vm1, %v271_v5 }
  0x74   : > { %p855_p12 = por %p854_p9, %p853_p7 }
  0x76   : > { %p856_p2 = pnand %p855_p12, %p849_p3 }
 0x146   : > { %v333_v8 = vpop.f32.mrb[0].mxu0  ;;  %v411_v14 = vpop.f32.mrb[0].mxu1 }
 0x147   : > { %v334_v9 = vadd.f32 %v631_v7, %v333_v8  ;;  %v655_v10 = vpop.f32.mrb[1].mxu0  ;;  %v663_v15 = vpop.f32.mrb[1].mxu1  ;;  %v412_v24 = vadd.f32 %v635_v22, %v411_v14 }
 0x148   : > { %v336_v11 = vpop.f32.mrb[2].mxu0  ;;  %v414_v17 = vpop.f32.mrb[2].mxu1 }
 0x149   : > { %v340_v12 = vand.u32 2147483647, %v334_v9  ;;  %v656_v13 = vpop.f32.mrb[3].mxu0  ;;  %v664_v18 = vpop.f32.mrb[3].mxu1  ;;  %v423_v27 = vrot.slane %v412_v24, 7  ;;  %v339_v31 = vmin.f32 %v334_v9, 0.0 }
 0x14b   : > { %v341_v16 = vsub.f32 0.0, %v340_v12  ;;  %v425_v33 = vsel %vm420_vm2, -1e+30, %v423_v27 }
 0x14d   : > { %v342_v19 = vmul.f32 1.442695, %v341_v16 }
 0x14f   : > { %740 = vpow2.f32 %v342_v19 }
 0x159   : > { %v741_v20 = vpop.eup %740 }
 0x15a   : > { %v344_v21 = vadd.f32 1.0, %v741_v20  ;;  %v347_v23 = vmul.f32 -0.5, %v741_v20  ;;  %v350_v26 = vand.u32 2147483647, %v741_v20 }
 0x15c   : > { %742 = vlog2.f32 %v344_v21  ;;  %v348_v25 = vadd.f32 1.0, %v347_v23  ;;  %vm351_vm3 = vcmp.lt.f32.partialorder %v350_v26, 0.0004427343 }
 0x15e   : > { %v349_v30 = vmul.f32 %v741_v20, %v348_v25 }
 0x166   : > { %v743_v28 = vpop.eup %742 }
 0x167   : > { %v346_v29 = vmul.f32 0.6931472, %v743_v28 }
 0x169   : > { %v352_v32 = vsel %vm351_vm3, %v349_v30, %v346_v29 }
 0x16a   : > { %v353_v34 = vsub.f32 %v339_v31, %v352_v32 }
 0x16c   : > { %v426_v35 = vadd.f32 %v425_v33, %v353_v34  ;;  %v418_v47 = vrot.slane %v353_v34, 7 }
 0x16e   : > { %v427_v36 = vmax.f32 %v426_v35, %v412_v24  ;;  %v428_v37 = vsub.f32 %v426_v35, %v412_v24  ;;  %v421_v51 = vsel %vm420_vm2, 0.0, %v418_v47 }
 0x16f   : > { %v443_v54 = vadd.f32 %v421_v51, %v353_v34 }
 0x170   : > { %v429_v38 = vand.u32 2147483647, %v428_v37 }
 0x171   : > { %v445_v5 = vrot.slane %v443_v54, 6 }
 0x172   : > { %v430_v39 = vsub.f32 0.0, %v429_v38 }
 0x173   : > { %v448_v9 = vsel %vm447_vm5, 0.0, %v445_v5 }
 0x174   : > { %v431_v40 = vmul.f32 1.442695, %v430_v39  ;;  %v470_v12 = vadd.f32 %v448_v9, %v443_v54 }
 0x176   : > { %744 = vpow2.f32 %v431_v40  ;;  %v472_v23 = vrot.slane %v470_v12, 4 }
 0x178   : > { %v475_v27 = vsel %vm474_vm7, 0.0, %v472_v23 }
 0x179   : > { %v497_v31 = vadd.f32 %v475_v27, %v470_v12 }
 0x180   : > { %v745_v41 = vpop.eup %744 }
 0x181   : > { %v433_v42 = vadd.f32 1.0, %v745_v41  ;;  %v436_v43 = vmul.f32 -0.5, %v745_v41  ;;  %v439_v45 = vand.u32 2147483647, %v745_v41 }
 0x183   : > { %746 = vlog2.f32 %v433_v42  ;;  %v437_v44 = vadd.f32 1.0, %v436_v43  ;;  %vm440_vm4 = vcmp.lt.f32.partialorder %v439_v45, 0.0004427343 }
 0x185   : > { %v438_v49 = vmul.f32 %v745_v41, %v437_v44 }
 0x18d   : > { %v747_v46 = vpop.eup %746 }
 0x18e   : > { %v435_v48 = vmul.f32 0.6931472, %v747_v46 }
 0x190   : > { %v441_v50 = vsel %vm440_vm4, %v438_v49, %v435_v48 }
 0x191   : > { %v442_v52 = vadd.f32 %v441_v50, %v427_v36 }
 0x193   : > { %v450_v53 = vrot.slane %v442_v52, 6 }
 0x195   : > { %v452_v55 = vsel %vm447_vm5, -1e+30, %v450_v53 }
 0x196   : > { %v453_v56 = vadd.f32 %v452_v55, %v443_v54 }
 0x198   : > { %v454_v57 = vmax.f32 %v453_v56, %v442_v52  ;;  %v455_v58 = vsub.f32 %v453_v56, %v442_v52 }
 0x19a   : > { %v456_v59 = vand.u32 2147483647, %v455_v58 }
 0x19c   : > { %v457_v60 = vsub.f32 0.0, %v456_v59 }
 0x19e   : > { %v458_v61 = vmul.f32 1.442695, %v457_v60 }
 0x1a0   : > { %748 = vpow2.f32 %v458_v61 }
 0x1aa   : > { %v749_v62 = vpop.eup %748 }
 0x1ab   : > { %v460_v63 = vadd.f32 1.0, %v749_v62  ;;  %v463_v0 = vmul.f32 -0.5, %v749_v62  ;;  %v466_v2 = vand.u32 2147483647, %v749_v62 }
 0x1ad   : > { %750 = vlog2.f32 %v460_v63  ;;  %v464_v1 = vadd.f32 1.0, %v463_v0  ;;  %vm467_vm6 = vcmp.lt.f32.partialorder %v466_v2, 0.0004427343 }
 0x1af   : > { %v465_v7 = vmul.f32 %v749_v62, %v464_v1 }
 0x1b7   : > { %v751_v4 = vpop.eup %750 }
 0x1b8   : > { %v462_v6 = vmul.f32 0.6931472, %v751_v4 }
 0x1ba   : > { %v468_v8 = vsel %vm467_vm6, %v465_v7, %v462_v6 }
 0x1bb   : > { %v469_v10 = vadd.f32 %v468_v8, %v454_v57 }
 0x1bd   : > { %v477_v11 = vrot.slane %v469_v10, 4 }
 0x1bf   : > { %v479_v13 = vsel %vm474_vm7, -1e+30, %v477_v11 }
 0x1c0   : > { %v480_v14 = vadd.f32 %v479_v13, %v470_v12 }
 0x1c2   : > { %v481_v15 = vmax.f32 %v480_v14, %v469_v10  ;;  %v482_v16 = vsub.f32 %v480_v14, %v469_v10 }
 0x1c4   : > { %v483_v17 = vand.u32 2147483647, %v482_v16 }
 0x1c6   : > { %v484_v18 = vsub.f32 0.0, %v483_v17 }
 0x1c8   : > { %v485_v19 = vmul.f32 1.442695, %v484_v18 }
 0x1ca   : > { %752 = vpow2.f32 %v485_v19 }
 0x1d4   : > { %v753_v20 = vpop.eup %752 }
 0x1d5   : > { %v487_v21 = vadd.f32 1.0, %v753_v20  ;;  %v490_v22 = vmul.f32 -0.5, %v753_v20  ;;  %v493_v25 = vand.u32 2147483647, %v753_v20 }
 0x1d7   : > { %754 = vlog2.f32 %v487_v21  ;;  %v491_v24 = vadd.f32 1.0, %v490_v22  ;;  %vm494_vm8 = vcmp.lt.f32.partialorder %v493_v25, 0.0004427343 }
 0x1d9   : > { %v492_v29 = vmul.f32 %v753_v20, %v491_v24 }
 0x1e1   : > { %v755_v26 = vpop.eup %754 }
 0x1e2   : > { %v489_v28 = vmul.f32 0.6931472, %v755_v26 }
 0x1e4   : > { %v495_v30 = vsel %vm494_vm8, %v492_v29, %v489_v28 }
 0x1e5   : > { %v496_v32 = vadd.f32 %v495_v30, %v481_v15 }
 0x1e7   : > { %v498_v33 = vmax.f32 %v497_v31, %v496_v32  ;;  %v499_v34 = vsub.f32 %v497_v31, %v496_v32 }
 0x1e9   : > { %v500_v35 = vand.u32 2147483647, %v499_v34 }
 0x1eb   : > { %v501_v36 = vsub.f32 0.0, %v500_v35 }
 0x1ed   : > { %v502_v37 = vmul.f32 1.442695, %v501_v36 }
 0x1ef   : > { %756 = vpow2.f32 %v502_v37 }
 0x1f9   : > { %v757_v38 = vpop.eup %756 }
 0x1fa   : > { %v504_v39 = vadd.f32 1.0, %v757_v38  ;;  %v507_v40 = vmul.f32 -0.5, %v757_v38  ;;  %v510_v42 = vand.u32 2147483647, %v757_v38 }
 0x1fc   : > { %758 = vlog2.f32 %v504_v39  ;;  %v508_v41 = vadd.f32 1.0, %v507_v40  ;;  %vm511_vm9 = vcmp.lt.f32.partialorder %v510_v42, 0.0004427343 }
 0x1fe   : > { %v509_v45 = vmul.f32 %v757_v38, %v508_v41 }
 0x206   : > { %v759_v43 = vpop.eup %758 }
 0x207   : > { %v506_v44 = vmul.f32 0.6931472, %v759_v43 }
 0x209   : > { %v512_v46 = vsel %vm511_vm9, %v509_v45, %v506_v44 }
 0x20a   : > { %v513_v47 = vadd.f32 %v512_v46, %v498_v33 }
 0x20c   : > { %v514_v48 = vadd.f32 %v513_v47, %v1139_v3 }
 0x20e   : > { %515 = vst.msk [vmem:[%s268_s28] sm:$0xff] %vm295_vm1, %v514_v48 }
 0x20f   : > { %859 = shalt.err (!%p856_p2)
}
 0x210   : > { %s860_s12 = scalar_lea.hbm %s1164_s15, 128  ;;  %s864_s26 = scalar_lea.hbm %s1214_s5, 256 }
 0x211   : > { %p861_p13 = scmp.ne.s32.totalorder %s1164_s15, %s860_s12  ;;  %p865_p4 = scmp.lt.u32.totalorder %s1164_s15, %s1214_s5 }
 0x212   : > { %p866_p5 = scmp.lt.u32.totalorder %s864_s26, %s860_s12  ;;  %p868_p11 = scmp.lt.u32.totalorder %s860_s12, %s1164_s15 }
 0x213   : > { %p862_p6 = pnand %p861_p13, %p1228_p0 }
 0x214   : > { %p867_p8 = por %p866_p5, %p865_p4 }
 0x215   : > { %p863_p10 = pneg %p862_p6 }
 0x216   : > { %p869_p1 = por %p868_p11, %p867_p8 }
 0x218   : > { %p870_p3 = pnand %p869_p1, %p863_p10 }
 0x21a   : > { %873 = shalt.err (!%p870_p3)
}
 0x21b   : > { %675 = dma.vmem_to_hbm [thread:$0]  (%p1228_p0), %s1166_s7, 128, %s1164_s15, %s517_s16  }
 0x21c PF: > { %s542_s11 = sand.u32 1, %s904_s18   ;;  %p1229_p7 = scmp.ne.s32.totalorder %s1219_s25, 0 }
 0x21d   : > { %p1230_p9 = scmp.ge.s32.totalorder %s916_s21, 2  ;;  %s543_s28 = scalar_lea.sflag [#allocation4], %s542_s11 }
 0x21f   : > { %p689_p12 = pnand %p1230_p9, %p1229_p7 }
 0x221   : > { %899 = dma.done.wait (!%p689_p12), %s543_s28, 128  }
 0x222   : > { %901 = vsyncadd (!%p689_p12), %s543_s28, 4294967168  ;;  %p19_p2 = scmp.ge.s32.totalorder %s1066_s14, 4   ;;  %s1231_s18 = smov %s908_s19 }
 0x223   : > { %s1232_s19 = smov %s912_s20  ;;  %s1233_s20 = smov %s1082_s27 }
 0x224   : > { %s1234_s21 = smov %s1066_s14  ;;  %21 = sbr.rel (!%p19_p2) target bundleno = 6 (0x6), region = 93 }
 0x22b   :  { %548 = vsyncpa [#allocation3], 1 }
 0x22c   :  { %550 = vsyncpa [#allocation3 + $0x1], 1 }
 0x22d   :  { %551 = vsyncpa [#allocation6], 1 }
 0x22e   :  { %552 = vsyncpa [#allocation4], 1 }
 0x22f   :  { %554 = vsyncpa [#allocation4 + $0x1], 1 }

</bundles_post_ra>
